<compile_context>
chip_gen: v7x
topology: tpu7x:2x2x1
jax: 0.10.0
libtpu: 0.0.40
codegen_flags: <defaults>
</compile_context>

<pallas_src>
import functools

import jax
import jax.numpy as jnp
from jax.experimental import pallas as pl
from jax.experimental.pallas import tpu as pltpu


def _round_up(n, m):
    return ((n + m - 1) // m) * m


def _minmax_scale_kernel(x_ref, o_ref, *, min_value, max_value):
    x = x_ref[...]
    # Row min/max on the native dtype (exact for bf16/int); only the (rows, 1)
    # statistics are cast to f32.
    x_min = jnp.min(x, axis=1, keepdims=True).astype(jnp.float32)
    x_max = jnp.max(x, axis=1, keepdims=True).astype(jnp.float32)

    # Matches torch: (x - x_min) / (x_max - x_min + 1e-8) * (max - min) + min.
    inv = pl.reciprocal(x_max - x_min + jnp.float32(1e-8), approx=False)
    s = jnp.float32(max_value - min_value) * inv
    xf = x if x.dtype == jnp.float32 else x.astype(jnp.float32)
    o_ref[...] = ((xf - x_min) * s + jnp.float32(min_value)).astype(o_ref.dtype)


def min_max_scaling(x, min_value=0.0, max_value=1.0, *, row_tile=None,
                    target_block_bytes=8 * 1024 * 1024):
    """Per-row min-max scaling of a (batch, features) array."""
    if x.size == 0:
        raise ValueError("Input tensor cannot be empty.")
    if x.ndim != 2:
        raise ValueError("Expected input of shape (batch, features).")

    B, F = x.shape
    itemsize = jnp.dtype(x.dtype).itemsize
    F_lane = _round_up(F, 128)                 # VMEM lane footprint of one row
    # Budget rows against f32-equivalent bytes so sub-f32 inputs keep VMEM/vreg
    # headroom for the f32 epilogue.
    bytes_per_row = F_lane * max(itemsize, 4)

    # Wide-F guard: even a minimal 8-row block (x~6 for double-buffered in+out
    # plus epilogue slack) must fit comfortably inside v7x's 64 MiB VMEM.
    if 8 * bytes_per_row > 12 * 1024 * 1024:
        # TODO(synk): split the feature axis into a second ("arbitrary") grid
        # dim with running row-min/max scratch + a rescale pass for very wide F.
        raise ValueError(
            f"features={F} is too wide for single-block-per-row tiling.")

    if row_tile is None:
        if B <= 8:
            row_tile = B                      # block row dim == full batch dim
        else:
            # Largest multiple-of-8 row tile within the target block bytes, but
            # keep >= ~4 grid blocks when B permits so the "parallel" axis can
            # shard across v7x's two TensorCores and stay double-buffered.
            by_bytes = max(8, (target_block_bytes // bytes_per_row) // 8 * 8)
            by_grid = _round_up(pl.cdiv(B, 4), 8)
            row_tile = max(8, min(by_bytes, by_grid))
    elif row_tile < B:
        row_tile = max(8, _round_up(row_tile, 8))
    else:
        row_tile = B

    grid = pl.cdiv(B, row_tile)     # partial last block handled by Pallas

    block_bytes = row_tile * F_lane * itemsize
    block_bytes_f32 = row_tile * F_lane * 4
    # Scoped VMEM: double-buffered in + out blocks plus epilogue slack, raised
    # above v5e's 16 MiB default and capped under v7x's 64 MiB physical VMEM.
    vmem_limit = int(min(48 << 20,
                         max(32 << 20, 4 * block_bytes + 2 * block_bytes_f32)))

    kernel = functools.partial(
        _minmax_scale_kernel,
        min_value=float(min_value),
        max_value=float(max_value),
    )

    return pl.pallas_call(
        kernel,
        out_shape=jax.ShapeDtypeStruct((B, F), x.dtype),
        grid_spec=pltpu.PrefetchScalarGridSpec(
            num_scalar_prefetch=0,
            grid=(grid,),
            in_specs=[pl.BlockSpec((row_tile, F), lambda i: (i, 0))],
            out_specs=pl.BlockSpec((row_tile, F), lambda i: (i, 0)),
        ),
        compiler_params=pltpu.CompilerParams(
            dimension_semantics=("parallel",),
            vmem_limit_bytes=vmem_limit,
        ),
    )(x)


def _reference(x, min_value=0.0, max_value=1.0):
    x = x.astype(jnp.float32)
    x_min = jnp.min(x, axis=1, keepdims=True)
    x_max = jnp.max(x, axis=1, keepdims=True)
    x_scaled = (x - x_min) / (x_max - x_min + 1e-8)
    return x_scaled * (max_value - min_value) + min_value


if __name__ == "__main__":
    key = jax.random.PRNGKey(0)

    # MinMaxScaling has no learnable parameters; min_value/max_value are
    # deterministic constructor constants (defaults 0.0 / 1.0).
    batch, features = 8, 32
    x = jax.random.normal(key, (batch, features), dtype=jnp.float32)

    out = jax.block_until_ready(min_max_scaling(x, 0.0, 1.0))
    ref = _reference(x, 0.0, 1.0)
    assert out.shape == x.shape and out.dtype == x.dtype
    assert jnp.allclose(out, ref, atol=1e-5, rtol=1e-5)

    # Awkward shape: non-multiple-of-8 batch, non-multiple-of-128 features,
    # exercising partial row blocks + masked lane stores with no host padding.
    x2 = jax.random.normal(jax.random.PRNGKey(1), (37, 200), dtype=jnp.float32)
    out2 = jax.block_until_ready(min_max_scaling(x2, -1.0, 1.0))
    ref2 = _reference(x2, -1.0, 1.0)
    assert out2.shape == x2.shape
    assert jnp.allclose(out2, ref2, atol=1e-5, rtol=1e-5)

    # Sub-f32 path: reduction on native bf16, f32 epilogue, bf16 store.
    x3 = jax.random.normal(jax.random.PRNGKey(2), (16, 130), dtype=jnp.bfloat16)
    out3 = jax.block_until_ready(min_max_scaling(x3, 0.0, 1.0))
    ref3 = _reference(x3, 0.0, 1.0)
    assert out3.shape == x3.shape and out3.dtype == x3.dtype
    assert jnp.allclose(out3.astype(jnp.float32), ref3, atol=3e-2)

    print("KERNEL_OK")
</pallas_src>

<mosaic_0001>
module attributes {stable_mosaic.version = 11 : i64} {
  func.func @_minmax_scale_kernel(%arg0: i32, %arg1: memref<8x32xf32, #tpu.memory_space<vmem>>, %arg2: memref<8x32xf32, #tpu.memory_space<vmem>>) attributes {dimension_semantics = [#tpu.dimension_semantics<parallel>], iteration_bounds = array<i64: 1>, scalar_prefetch = 0 : i64, scratch_operands = 0 : i64, tpu.core_type = #tpu.core_type<tc>, window_params = [{transform_indices = @transform_0, window_bounds = array<i64: 8, 32>}, {transform_indices = @transform_1, window_bounds = array<i64: 8, 32>}]} {
    %c0 = arith.constant 0 : index
    %c0_0 = arith.constant 0 : index
    %0 = vector.load %arg1[%c0, %c0_0] : memref<8x32xf32, #tpu.memory_space<vmem>>, vector<8x32xf32>
    %cst = arith.constant dense<0x7F800000> : vector<8xf32>
    %1 = vector.multi_reduction <minimumf>, %0, %cst [1] : vector<8x32xf32> to vector<8xf32>
    %2 = vector.shape_cast %1 : vector<8xf32> to vector<8x1xf32>
    %cst_1 = arith.constant dense<0xFF800000> : vector<8xf32>
    %3 = vector.multi_reduction <maximumf>, %0, %cst_1 [1] : vector<8x32xf32> to vector<8xf32>
    %4 = vector.shape_cast %3 : vector<8xf32> to vector<8x1xf32>
    %5 = arith.subf %4, %2 : vector<8x1xf32>
    %cst_2 = arith.constant 9.99999993E-9 : f32
    %6 = vector.broadcast %cst_2 : f32 to vector<8x1xf32>
    %7 = arith.addf %5, %6 : vector<8x1xf32>
    %8 = tpu.reciprocal %7 : vector<8x1xf32> -> vector<8x1xf32>
    %cst_3 = arith.constant 1.000000e+00 : f32
    %9 = vector.broadcast %cst_3 : f32 to vector<8x1xf32>
    %10 = arith.mulf %9, %8 : vector<8x1xf32>
    %11 = vector.broadcast %2 : vector<8x1xf32> to vector<8x32xf32>
    %12 = arith.subf %0, %11 : vector<8x32xf32>
    %13 = vector.broadcast %10 : vector<8x1xf32> to vector<8x32xf32>
    %14 = arith.mulf %12, %13 : vector<8x32xf32>
    %cst_4 = arith.constant 0.000000e+00 : f32
    %15 = vector.broadcast %cst_4 : f32 to vector<8x32xf32>
    %16 = arith.addf %14, %15 : vector<8x32xf32>
    %c0_5 = arith.constant 0 : index
    %c0_6 = arith.constant 0 : index
    %17 = vector.load %arg2[%c0_5, %c0_6] : memref<8x32xf32, #tpu.memory_space<vmem>>, vector<8x32xf32>
    tpu.vector_store %arg2[%c0_5, %c0_6], %16 {strides = array<i32>} : memref<8x32xf32, #tpu.memory_space<vmem>>, vector<8x32xf32>,
    return
  }
  func.func @transform_0(%arg0: i32) -> (i32, i32) {
    %c0_i32 = arith.constant 0 : i32
    %c0_i32_0 = arith.constant 0 : i32
    return %arg0, %c0_i32 : i32, i32
  }
  func.func @transform_1(%arg0: i32) -> (i32, i32) {
    %c0_i32 = arith.constant 0 : i32
    %c0_i32_0 = arith.constant 0 : i32
    return %arg0, %c0_i32 : i32, i32
  }
}

</mosaic_0001>

<bundles_post_ra>
// kernel: tpu_custom_call.1
= control target key start
LH: loop header
LB: loop body
LE: loop exit
PB: predicated region body
PF: predicated region fallthrough
CT: control target
= control target key end

     0   :  { %6 = vsyncpa [#allocation3], 0  ;;  %s142_s0 = inlined_call_operand.hbm [shape: f32[8,32], index: 0, kind: input, shape index: {}]   ;;  %s143_s1 = inlined_call_operand.hbm [shape: f32[8,32], index: 1, kind: output, shape index: {}]  }
   0x1   :  { %7 = vsyncpa [#allocation4], 0  ;;  %s103_s6 = smov [#allocation2]   ;;  %s55_s10 = scalar_lea.hbm %s142_s0, 128 }
   0x2   :  { %s14_s7 = sshll.u32 %s103_s6, 4  ;;  %p56_p0 = scmp.ne.s32.totalorder %s142_s0, %s55_s10  ;;  %s15_s7 = int_to_ptr.vmem [resolvable:$true] %s14_s7 }
   0x3   :  { %p59_p1 = scmp.lt.u32.totalorder %s55_s10, %s142_s0 }
   0x5   :  { %p61_p2 = pnand %p59_p1, %p56_p0 }
   0x7   :  { %64 = shalt.err (!%p61_p2)
}
   0x8   :  { %s65_s15 = scalar_lea.vmem %s15_s7, 128  ;;  %p70_p4 = scmp.lt.s32.totalorder %s15_s7, %s15_s7 }
   0x9   :  { %p66_p3 = scmp.ne.s32.totalorder %s15_s7, %s65_s15  ;;  %p71_p5 = scmp.lt.s32.totalorder %s65_s15, %s65_s15 }
   0xb   :  { %p72_p6 = por %p71_p5, %p70_p4 }
   0xd   :  { %p73_p7 = pnand %p72_p6, %p66_p3 }
   0xf   :  { %76 = shalt.err (!%p73_p7)
}
  0x10   :  { %17 = dma.hbm_to_vmem [thread:$0]  %s142_s0, 128, %s15_s7, [#allocation3]  }
  0x11   :  { %99 = dma.done.wait [#allocation3], 128  }
  0x12   :  { %100 = vsyncadd [#allocation3], 4294967168  ;;  %vm22_vm0 = vcmask 261120   ;;  %v21_v0 = vld [vmem:[#allocation2] sm:$0xff]  ;;  %s104_s18 = smov [#allocation5]  }
  0x13   :  { %v23_v1 = vsel %vm22_vm0, %v21_v0, inf  ;;  %v26_v2 = vsel %vm22_vm0, %v21_v0, -inf  ;;  %s42_s19 = sshll.u32 %s104_s18, 4  ;;  %s43_s19 = int_to_ptr.vmem [resolvable:$true] %s42_s19 }
  0x14   :  { %24 = vmin.xlane.f32.xlu0 %v23_v1  ;;  %s77_s0 = scalar_lea.vmem %s43_s19, 128  ;;  %p82_p9 = scmp.lt.s32.totalorder %s43_s19, %s43_s19 }
  0x15   :  { %p78_p8 = scmp.ne.s32.totalorder %s43_s19, %s77_s0  ;;  %p83_p10 = scmp.lt.s32.totalorder %s77_s0, %s77_s0 }
  0x17   :  { %p84_p11 = por %p83_p10, %p82_p9 }
  0x18   :  { %27 = vmax.xlane.f32.xlu0 %v26_v2 }
  0x19   :  { %p85_p12 = pnand %p84_p11, %p78_p8 }
  0xa1   :  { %v25_v3 = vpop.xlane.xlu0 %24 }
  0xa2   :  { %v32_v7 = vsub.f32 %v21_v0, %v25_v3 }
  0xa5   :  { %v28_v4 = vpop.xlane.xlu0 %27 }
  0xa6   :  { %v29_v5 = vsub.f32 %v28_v4, %v25_v3 }
  0xa8   :  { %v30_v6 = vadd.f32 1e-08, %v29_v5 }
  0xaa   :  { %53 = vrcp.f32 %v30_v6 }
  0xb4   :  { %v54_v8 = vpop.eup %53 }
  0xb5   :  { %v33_v9 = vmul.f32 %v54_v8, %v32_v7 }
  0xb7   :  { %35 = vst.msk [vmem:[#allocation5] sm:$0xff] %vm22_vm0, %v33_v9 }
  0xb8   :  { %88 = shalt.err (!%p85_p12)
}
  0xb9   :  { %s89_s22 = scalar_lea.hbm %s143_s1, 128 }
  0xba   :  { %p90_p13 = scmp.ne.s32.totalorder %s143_s1, %s89_s22  ;;  %p93_p0 = scmp.lt.u32.totalorder %s89_s22, %s143_s1 }
  0xbc   :  { %p95_p1 = pnand %p93_p0, %p90_p13 }
  0xbe   :  { %98 = shalt.err (!%p95_p1)
}
  0xbf   :  { %45 = dma.vmem_to_hbm [thread:$0]  %s43_s19, 128, %s143_s1, [#allocation4]  }
  0xc0   :  { %101 = dma.done.wait [#allocation4], 128  }
  0xc1   :  { %102 = vsyncadd [#allocation4], 4294967168 }
  0xc2   :  { %49 = vsyncpa [#allocation3], 1 }
  0xc3   :  { %50 = vsyncpa [#allocation4], 1 }

</bundles_post_ra>
